<compile_context>
chip_gen: v7x
topology: tpu7x:2x2x1
jax: 0.10.0
libtpu: 0.0.40
codegen_flags: <defaults>
</compile_context>

<pallas_src>
import functools
import math

import jax
import jax.numpy as jnp
from jax.experimental import pallas as pl
from jax.experimental.pallas import tpu as pltpu

LANE = 128
_VMEM_CAP = 48 << 20            # stay well under v7x's 64 MiB physical VMEM/TC
_RESIDENT_HW_BUDGET = 32 << 20  # max VMEM the resident HW copy may take (2 bufs)


def _round_up(x, m):
    return ((x + m - 1) // m) * m


def _compiler_params(per_step_tile_bytes, dim_semantics):
    """Scoped-VMEM request from the real tile footprint, with headroom."""
    limit = int(per_step_tile_bytes * 1.5) + (4 << 20)
    limit = max(16 << 20, min(limit, _VMEM_CAP))
    return pltpu.CompilerParams(
        dimension_semantics=dim_semantics,
        vmem_limit_bytes=limit,
    )


# ----------------------------------------------------------------------------
# Kernel 1: feature transform  HW = H @ W   (single dot per row block)
# ----------------------------------------------------------------------------
def _feature_kernel(h_ref, w_ref, o_ref):
    o_ref[...] = jnp.dot(h_ref[...], w_ref[...],
                         preferred_element_type=jnp.float32).astype(o_ref.dtype)


def feature_transform(h, w, *, tm=512):
    """HW = H @ W.  h: (N, din) bf16, w: (din, dout) bf16 -> (N, dout) bf16.

    din/dout are small (<= a few hundred) for this module, so the whole K
    dimension fits one MXU pass: no reduction grid axis, no f32 accumulator,
    and W stays resident in VMEM (its block index never changes).
    """
    n, din = h.shape
    dout = w.shape[1]
    grid = (n // tm,)

    tile_bytes = (2 * tm * din * 2      # H tiles, double-buffered
                  + 2 * din * dout * 2  # W (resident; budget 2 buffers anyway)
                  + 2 * tm * dout * 2)  # output tiles
    cost = pl.CostEstimate(flops=2 * n * din * dout, transcendentals=0,
                           bytes_accessed=(n * din + din * dout + n * dout) * 2)

    return pl.pallas_call(
        _feature_kernel,
        out_shape=jax.ShapeDtypeStruct((n, dout), jnp.bfloat16),
        grid_spec=pltpu.PrefetchScalarGridSpec(
            num_scalar_prefetch=0,
            grid=grid,
            in_specs=[
                pl.BlockSpec((tm, din), lambda i: (i, 0)),
                pl.BlockSpec((din, dout), lambda i: (0, 0)),   # resident W
            ],
            out_specs=pl.BlockSpec((tm, dout), lambda i: (i, 0)),
        ),
        compiler_params=_compiler_params(tile_bytes, ("parallel",)),
        cost_estimate=cost,
    )(h, w)


# ----------------------------------------------------------------------------
# Kernel 2: aggregation  out = act(A_hat @ HW + b)
# ----------------------------------------------------------------------------
def _aggregate_kernel(a_ref, hw_ref, b_ref, o_ref, acc_ref, *,
                      apply_relu, hw_resident, tk):
    k = pl.program_id(1)

    @pl.when(k == 0)
    def _():
        acc_ref[...] = jnp.zeros_like(acc_ref)

    if hw_resident:
        # Full HW is resident in VMEM; slice the K panel for this step.
        hw = hw_ref[pl.ds(pl.multiple_of(k * tk, tk), tk), :]
    else:
        hw = hw_ref[...]
    acc_ref[...] += jnp.dot(a_ref[...], hw, preferred_element_type=jnp.float32)

    @pl.when(k == pl.num_programs(1) - 1)
    def _():
        out = acc_ref[...] + b_ref[...]
        if apply_relu:
            out = jnp.maximum(out, 0.0)
        o_ref[...] = out.astype(o_ref.dtype)


def aggregate(a_hat, hw, b, *, apply_relu, out_dtype, tm=512, tk=512):
    """out = act(A_hat @ HW + b).  a_hat: (N, N) bf16, hw: (N, dout) bf16.

    A_hat is the only truly streamed operand; HW is kept VMEM-resident when it
    fits the budget (constant block index -> fetched once), removing the
    (N/tm)-fold HBM re-reads of the previous version on a bandwidth-bound op.
    """
    n = a_hat.shape[0]
    dout = hw.shape[1]
    b2d = b.reshape(1, dout).astype(jnp.float32)
    grid = (n // tm, n // tk)
    out_itemsize = jnp.dtype(out_dtype).itemsize

    resident_hw_bytes = 2 * n * dout * 2   # conservatively budget 2 buffers
    hw_resident = resident_hw_bytes <= _RESIDENT_HW_BUDGET

    if hw_resident:
        hw_spec = pl.BlockSpec((n, dout), lambda i, k: (0, 0))
        hw_tile_bytes = resident_hw_bytes
        hw_hbm_bytes = n * dout * 2                    # fetched exactly once
    else:
        hw_spec = pl.BlockSpec((tk, dout), lambda i, k: (k, 0))
        hw_tile_bytes = 2 * tk * dout * 2
        hw_hbm_bytes = (n // tm) * n * dout * 2        # re-read per row block

    tile_bytes = (2 * tm * tk * 2                      # A tiles, double-buffered
                  + hw_tile_bytes                      # HW (resident or streamed)
                  + 2 * tm * dout * out_itemsize       # output tiles
                  + tm * dout * 4                      # f32 accumulator
                  + 2 * dout * 4)                      # bias
    cost = pl.CostEstimate(
        flops=2 * n * n * dout, transcendentals=0,
        bytes_accessed=(n * n * 2 + hw_hbm_bytes + dout * 4
                        + n * dout * out_itemsize))

    kernel = functools.partial(_aggregate_kernel, apply_relu=apply_relu,
                               hw_resident=hw_resident, tk=tk)
    return pl.pallas_call(
        kernel,
        out_shape=jax.ShapeDtypeStruct((n, dout), out_dtype),
        grid_spec=pltpu.PrefetchScalarGridSpec(
            num_scalar_prefetch=0,
            grid=grid,
            in_specs=[
                pl.BlockSpec((tm, tk), lambda i, k: (i, k)),
                hw_spec,
                pl.BlockSpec((1, dout), lambda i, k: (0, 0)),
            ],
            out_specs=pl.BlockSpec((tm, dout), lambda i, k: (i, 0)),
            scratch_shapes=[pltpu.VMEM((tm, dout), jnp.float32)],
        ),
        compiler_params=_compiler_params(tile_bytes, ("parallel", "arbitrary")),
        cost_estimate=cost,
    )(a_hat, hw, b2d)


# ----------------------------------------------------------------------------
# Glue: normalized adjacency from edge_index (plain JAX, not the hot path)
# ----------------------------------------------------------------------------
def normalized_adjacency(edge_index, num_nodes):
    """D^{-1/2} (A + I) D^{-1/2} as a dense (N, N) f32 matrix."""
    src, dst = edge_index[0], edge_index[1]
    a = jnp.zeros((num_nodes, num_nodes), jnp.float32)
    a = a.at[src, dst].set(1.0)
    a = a + jnp.eye(num_nodes, dtype=jnp.float32)          # self loops
    deg = jnp.sum(a, axis=1)
    d_inv_sqrt = jnp.where(deg > 0, jax.lax.rsqrt(deg), 0.0)
    return a * d_inv_sqrt[:, None] * d_inv_sqrt[None, :]


# ----------------------------------------------------------------------------
# GraphEncoder forward (GCN branch): 4 layers, per-node output
# ----------------------------------------------------------------------------
def init_gcn_params(key, in_dim, hidden_dim, num_layers):
    params = []
    dims = [in_dim] + [hidden_dim] * num_layers
    for i in range(num_layers):
        key, wk = jax.random.split(key)
        fan_in, fan_out = dims[i], dims[i + 1]
        scale = jnp.sqrt(2.0 / (fan_in + fan_out)).astype(jnp.float32)
        w = jax.random.normal(wk, (fan_in, fan_out), jnp.float32) * scale
        b = jnp.zeros((fan_out,), jnp.float32)
        params.append((w, b))
    return params


def graph_encoder_forward(x, edge_index, params, *, tm=512, tk=512):
    """Equivalent of GraphEncoder(model='GCN').forward(graph) -> r."""
    n, in_dim = x.shape
    num_layers = len(params)
    out_dim = params[-1][0].shape[1]

    # Node count is padded to the row/K tile granularity; feature dims only to
    # the 128-lane width (decoupled from tm/tk, so raising the tiles never
    # widens the hidden dimension).  Zero pad rows/cols are exact no-ops for
    # the returned (valid) rows: A_hat's padded columns are zero, so pad-row
    # garbage (relu of bias) never leaks into valid rows.
    row_mult = math.lcm(tm, tk)
    n_pad = _round_up(n, row_mult)

    # Cast to bf16 at (n, n) and pad afterwards: no padded-size f32 temporaries.
    a_pad = jnp.pad(normalized_adjacency(edge_index, n).astype(jnp.bfloat16),
                    ((0, n_pad - n), (0, n_pad - n)))

    in_pad = _round_up(in_dim, LANE)
    h = jnp.pad(x.astype(jnp.bfloat16), ((0, n_pad - n), (0, in_pad - in_dim)))

    for li, (w, b) in enumerate(params):
        din, dout = w.shape
        din_p = _round_up(din, LANE)
        dout_p = _round_up(dout, LANE)
        w_p = jnp.pad(w.astype(jnp.bfloat16),
                      ((0, din_p - din), (0, dout_p - dout)))
        b_p = jnp.pad(b.astype(jnp.float32), (0, dout_p - dout))

        is_last = li == num_layers - 1
        hw = feature_transform(h, w_p, tm=tm)               # (n_pad, dout_p) bf16
        h = aggregate(a_pad, hw, b_p,
                      apply_relu=not is_last,
                      out_dtype=jnp.float32 if is_last else jnp.bfloat16,
                      tm=tm, tk=tk)

    return h[:n, :out_dim]


# ----------------------------------------------------------------------------
# Pure-JAX reference (mirrors the bf16 quantization of the kernel path)
# ----------------------------------------------------------------------------
def reference_forward(x, edge_index, params):
    n = x.shape[0]
    a_hat = normalized_adjacency(edge_index, n).astype(jnp.bfloat16)
    h = x.astype(jnp.bfloat16)
    num_layers = len(params)
    out = None
    for li, (w, b) in enumerate(params):
        hw = jnp.dot(h, w.astype(jnp.bfloat16),
                     preferred_element_type=jnp.float32).astype(jnp.bfloat16)
        out = jnp.dot(a_hat, hw, preferred_element_type=jnp.float32) + b[None, :]
        if li < num_layers - 1:
            out = jnp.maximum(out, 0.0)
            h = out.astype(jnp.bfloat16)
    return out


if __name__ == "__main__":
    # Small shapes consistent with the module: GCN(in_dim=256, hidden=256, 4 layers).
    # N=640 pads to 1024 -> exercises a real 2x2 aggregate grid and pad handling.
    N = 640           # nodes
    E = 2048          # directed edges
    IN_DIM = 256      # module default in_dim
    HIDDEN = 256      # module default hidden_dim
    NUM_LAYERS = 4    # GCN(in_dim, hidden_dim=256, num_layers=4)

    key = jax.random.PRNGKey(0)
    kx, ke, kp = jax.random.split(key, 3)

    x = jax.random.normal(kx, (N, IN_DIM), jnp.float32)
    edge_index = jax.random.randint(ke, (2, E), 0, N, jnp.int32)
    params = init_gcn_params(kp, IN_DIM, HIDDEN, NUM_LAYERS)

    r = graph_encoder_forward(x, edge_index, params)
    r = jax.block_until_ready(r)

    r_ref = reference_forward(x, edge_index, params)
    assert r.shape == (N, HIDDEN), r.shape
    assert r.dtype == jnp.float32
    assert jnp.allclose(r, r_ref, atol=2e-2, rtol=2e-2), "mismatch vs reference"

    print("KERNEL_OK")
</pallas_src>

<mosaic_0001>
module attributes {stable_mosaic.version = 11 : i64} {
  func.func @_feature_kernel(%arg0: i32, %arg1: memref<512x256xbf16, #tpu.memory_space<vmem>>, %arg2: memref<256x256xbf16, #tpu.memory_space<vmem>>, %arg3: memref<512x256xbf16, #tpu.memory_space<vmem>>) attributes {dimension_semantics = [#tpu.dimension_semantics<parallel>], iteration_bounds = array<i64: 2>, scalar_prefetch = 0 : i64, scratch_operands = 0 : i64, tpu.core_type = #tpu.core_type<tc>, window_params = [{transform_indices = @transform_0, window_bounds = array<i64: 512, 256>}, {pipeline_mode = #tpu.pipeline_mode<synchronous>, transform_indices = @transform_1, window_bounds = array<i64: 256, 256>}, {transform_indices = @transform_2, window_bounds = array<i64: 512, 256>}]} {
    %c0 = arith.constant 0 : index
    %c0_0 = arith.constant 0 : index
    %0 = vector.load %arg1[%c0, %c0_0] : memref<512x256xbf16, #tpu.memory_space<vmem>>, vector<512x256xbf16>
    %c0_1 = arith.constant 0 : index
    %c0_2 = arith.constant 0 : index
    %1 = vector.load %arg2[%c0_1, %c0_2] : memref<256x256xbf16, #tpu.memory_space<vmem>>, vector<256x256xbf16>
    %cst = arith.constant dense<0.000000e+00> : vector<512x256xf32>
    %2 = tpu.matmul %0, %1, %cst {dimension_numbers = #tpu.dot_dimension_numbers<[1], [0], [0], [1], [0, 0, 1, 1], [], []>} : vector<512x256xbf16>, vector<256x256xbf16>, vector<512x256xf32> -> vector<512x256xf32>
    %3 = arith.truncf %2 : vector<512x256xf32> to vector<512x256xbf16>
    %c0_3 = arith.constant 0 : index
    %c0_4 = arith.constant 0 : index
    %4 = vector.load %arg3[%c0_3, %c0_4] : memref<512x256xbf16, #tpu.memory_space<vmem>>, vector<512x256xbf16>
    tpu.vector_store %arg3[%c0_3, %c0_4], %3 {strides = array<i32>} : memref<512x256xbf16, #tpu.memory_space<vmem>>, vector<512x256xbf16>,
    return
  }
  func.func @transform_0(%arg0: i32) -> (i32, i32) {
    %c0_i32 = arith.constant 0 : i32
    %c0_i32_0 = arith.constant 0 : i32
    return %arg0, %c0_i32 : i32, i32
  }
  func.func @transform_1(%arg0: i32) -> (i32, i32) {
    %c0_i32 = arith.constant 0 : i32
    %c0_i32_0 = arith.constant 0 : i32
    %c0_i32_1 = arith.constant 0 : i32
    return %c0_i32, %c0_i32_0 : i32, i32
  }
  func.func @transform_2(%arg0: i32) -> (i32, i32) {
    %c0_i32 = arith.constant 0 : i32
    %c0_i32_0 = arith.constant 0 : i32
    return %arg0, %c0_i32 : i32, i32
  }
}

</mosaic_0001>

<bundles_post_ra>
// kernel: tpu_custom_call.1
= control target key start
LH: loop header
LB: loop body
LE: loop exit
PB: predicated region body
PF: predicated region fallthrough
CT: control target
= control target key end

     0   :  { %7 = vsyncpa [#allocation3], 0  ;;  %s2634_s0 = inlined_call_operand.hbm [shape: bf16[1024,256], index: 0, kind: input, shape index: {}]   ;;  %s2635_s1 = inlined_call_operand.hbm [shape: bf16[256,256], index: 1, kind: input, shape index: {}]   ;;  %s2636_s2 = inlined_call_operand.hbm [shape: bf16[1024,256], index: 2, kind: output, shape index: {}]  }
   0x1   :  { %9 = vsyncpa [#allocation3 + $0x1], 0 }
   0x2   :  { %10 = vsyncpa [#allocation6], 0 }
   0x3   :  { %11 = vsyncpa [#allocation4], 0 }
   0x4   :  { %13 = vsyncpa [#allocation4 + $0x1], 0  ;;  %s2290_s9 = smov 0   ;;  %s2292_s10 = smov 0  }
   0x5   :  { %s2294_s11 = smov 0   ;;  %s2296_s12 = smov 0  }
   0x6 LB: > { %s2311_s13 = sadd.s32 4294967295, %s2266_s12   ;;  %s1655_s14 = sadd.s32 4294967294, %s2266_s12   ;;  %s2266_s12 = sphi %s2296_s12, %s2656_s12   ;;  %s2262_s11 = sphi %s2294_s11, %s2655_s11   ;;  %s2258_s10 = sphi %s2292_s10, %s2654_s10   ;;  %s2254_s9 = sphi %s2290_s9, %s2653_s9  }
   0x7   : > { %p39_p0 = scmp.ne.s32.totalorder %s2258_s10, %s2254_s9  ;;  %p2637_p1 = scmp.eq.s32.totalorder %s2311_s13, 0 }
   0x8   : > { %p90_p3 = scmp.eq.s32.totalorder %s1655_s14, 1  ;;  %p1656_p5 = scmp.ge.s32.totalorder %s2266_s12, 1 }
   0x9   : > { %p2320_p4 = por %p2637_p1, %p39_p0  ;;  %p97_p7 = scmp.lt.s32.totalorder %s2266_s12, 3 }
   0xa   : > { %p2325_p6 = por %p90_p3, %p39_p0  ;;  %s2268_s18 = smov [#allocation5]  }
   0xb   : > { %s2640_s15 = scalar_select %p2320_p4, 1, 0 }
   0xc   : > { %s2641_s16 = scalar_select %p2325_p6, 1, 0 }
   0xd   : > { %p2330_p8 = pnand %p1656_p5, %p97_p7  ;;  %s109_s19 = sshll.u32 %s2268_s18, 4  ;;  %s2334_s19 = int_to_ptr.vmem [resolvable:$true] %s109_s19 }
   0xe   : > { %s2346_s21 = sadd.s32 1, %s2266_s12   ;;  %s26_s22 = sadd.s32 1, %s2262_s11 }
   0xf   : > { %s2642_s17 = scalar_select %p2330_p8, 1, 0 }
  0x10   : > { %p1941_p9 = pneg %p2330_p8  ;;  %s23_s23 = ssub.s32 %s2266_s12, %s2346_s21 }
  0x11   : > { %s2138_s26 = scalar_lea.hbm %s2635_s1, 4096 }
  0x12   : > { %p2341_p11 = pnand %p1941_p9, %p2637_p1  ;;  %p2139_p12 = scmp.ne.s32.totalorder %s2635_s1, %s2138_s26 }
  0x13   : > { %p2145_p5 = scmp.lt.u32.totalorder %s2138_s26, %s2635_s1 }
  0x14   : > { %p2140_p13 = pneg %p2341_p11 }
  0x16   : > { %p2141_p0 = pnand %p2140_p13, %p2139_p12 }
  0x18   : > { %p2142_p3 = pneg %p2141_p0 }
  0x1a   : > { %p2147_p7 = pnand %p2145_p5, %p2142_p3 }
  0x1c   : > { %2150 = shalt.err (!%p2147_p7)
}
  0x1d   : > { %s2151_s3 = scalar_lea.vmem %s2334_s19, 4096  ;;  %p2159_p2 = scmp.lt.s32.totalorder %s2334_s19, %s2334_s19 }
  0x1e   : > { %p2152_p9 = scmp.ne.s32.totalorder %s2334_s19, %s2151_s3  ;;  %p2160_p6 = scmp.lt.s32.totalorder %s2151_s3, %s2151_s3 }
  0x20   : > { %p2154_p10 = pnand %p2152_p9, %p2140_p13  ;;  %p2161_p4 = por %p2160_p6, %p2159_p2 }
  0x22   : > { %p2155_p1 = pneg %p2154_p10 }
  0x24   : > { %p2162_p8 = pnand %p2161_p4, %p2155_p1 }
  0x26   : > { %2165 = shalt.err (!%p2162_p8)
}
  0x27   : > { %s2269_s4 = smov 128   ;;  %s2270_s5 = smov 8  }
  0x28   : > { %1944 = dma.hbm_to_vmem [thread:$0]  (!%p2341_p11), %s2635_s1, 4096, %s2334_s19, [#allocation6], %s2269_s4, %s2269_s4, %s2270_s5  }
  0x29   : > { %p24_p1 = scmp.eq.s32.totalorder %s23_s23, 0  ;;  %p33_p2 = scmp.ne.s32.totalorder %s2262_s11, %s2258_s10 }
  0x2a   : > { %p34_p4 = scmp.eq.s32.totalorder %s2266_s12, 0  ;;  %p1954_p6 = scmp.lt.s32.totalorder %s2266_s12, 2 }
  0x2b   : > { %s2380_s8 = scalar_select %p24_p1, %s2262_s11, %s26_s22  }
  0x2c   : > { %p35_p8 = por %p34_p4, %p33_p2  ;;  %p2644_p10 = scmp.eq.s32.totalorder %s2311_s13, 1 }
  0x2d   : > { %s123_s18 = sand.u32 1, %s2262_s11   ;;  %s1834_s20 = sshll.u32 %s2266_s12, 13 }
  0x2e   : > { %p2384_p12 = por %p2644_p10, %p33_p2  ;;  %s1659_s24 = sshll.u32 %s123_s18, 9 }
  0x2f   : > { %s2393_s27 = scalar_lea.hbm %s2634_s0, %s1834_s20  ;;  %s127_s19 = scalar_lea.vmem [#allocation2], %s1659_s24 }
  0x30   : > { %s135_s22 = sshll.u32 %s127_s19, 4  ;;  %p2395_p11 = pnand %p1954_p6, %p35_p8  ;;  %s2399_s22 = int_to_ptr.vmem [resolvable:$true] %s135_s22 }
  0x31   : > { %s2401_s28 = scalar_lea.sflag [#allocation3], %s123_s18  ;;  %s2166_s29 = scalar_lea.hbm %s2393_s27, 8192 }
  0x32   : > { %p2167_p13 = scmp.ne.s32.totalorder %s2393_s27, %s2166_s29  ;;  %p2168_p0 = pneg %p2395_p11 }
  0x33   : > { %s2171_s6 = scalar_lea.hbm %s2634_s0, 16384  ;;  %p2172_p7 = scmp.lt.u32.totalorder %s2393_s27, %s2634_s0 }
  0x34   : > { %p2169_p3 = pnand %p2168_p0, %p2167_p13  ;;  %p2173_p9 = scmp.lt.u32.totalorder %s2171_s6, %s2166_s29 }
  0x35   : > { %p2175_p2 = scmp.lt.u32.totalorder %s2166_s29, %s2393_s27 }
  0x36   : > { %p2170_p5 = pneg %p2169_p3  ;;  %p2174_p1 = por %p2173_p9, %p2172_p7 }
  0x38   : > { %p2176_p4 = por %p2175_p2, %p2174_p1 }
  0x3a   : > { %p2177_p6 = pnand %p2176_p4, %p2170_p5 }
  0x3c   : > { %2180 = shalt.err (!%p2177_p6)
}
  0x3d   : > { %s2181_s18 = scalar_lea.vmem %s2399_s22, 8192  ;;  %s2271_s24 = smov [#allocation2]  }
  0x3e   : > { %p2182_p8 = scmp.ne.s32.totalorder %s2399_s22, %s2181_s18  ;;  %s2186_s25 = sshll.u32 %s2271_s24, 4  ;;  %s2187_s25 = int_to_ptr.vmem [resolvable:$false] %s2186_s25 }
  0x3f   : > { %s2188_s26 = scalar_lea.vmem %s2187_s25, 16384  ;;  %p2189_p3 = scmp.lt.s32.totalorder %s2399_s22, %s2187_s25 }
  0x40   : > { %p2184_p10 = pnand %p2182_p8, %p2168_p0  ;;  %p2190_p7 = scmp.lt.s32.totalorder %s2188_s26, %s2181_s18 }
  0x42   : > { %p2185_p13 = pneg %p2184_p10  ;;  %p2191_p9 = por %p2190_p7, %p2189_p3 }
  0x44   : > { %p2192_p1 = pnand %p2191_p9, %p2185_p13 }
  0x46   : > { %2195 = shalt.err (!%p2192_p1)
}
  0x47   : > { %1948 = dma.hbm_to_vmem [thread:$0]  (!%p2395_p11), %s2393_s27, 8192, %s2399_s22, %s2401_s28, %s2269_s4, %s2269_s4, %s2270_s5  }
  0x48   : > { %p2647_p0 = scmp.ne.s32.totalorder %s2642_s17, 0 }
  0x49   : > { %s2435_s19 = sand.u32 (!%p2647_p0), 1, %s2258_s10   ;;  %p2648_p5 = scmp.ne.s32.totalorder (!%p2647_p0), %s2640_s15, 0 }
  0x4a   : > { %147 = sbr.rel (%p2647_p0) target bundleno = 502 (0x1f6), region = 28  ;;  %s1664_s29 = sshll.u32 (!%p2647_p0), %s2435_s19, 9 }
  0x4b   : > { %s150_s30 = scalar_lea.sflag (!%p2647_p0), [#allocation3], %s2435_s19  ;;  %s2441_s23 = scalar_lea.vmem (!%p2647_p0), [#allocation2], %s1664_s29 }
  0x51   : > { %2241 = dma.done.wait (%p2648_p5), %s150_s30, 8192  }
  0x52   : > { %2243 = vsyncadd (%p2648_p5), %s150_s30, 4294959104  ;;  %p2649_p11 = scmp.eq.s32.totalorder %s2311_s13, 0 }
  0x54   : > { %2245 = dma.done.wait (%p2649_p11), [#allocation6], 4096   ;;  %p2650_p2 = pmov %p2649_p11 }
  0x55   : > { %v1994_v0 = vld [vmem:[#allocation5 + $0x4] ss:$8 sps:$4 sm:$0xff]   ;;  %v1996_v1 = vld [vmem:[#allocation5] ss:$8 sps:$4 sm:$0xff]   ;;  %v1997_v2 = vld [vmem:[#allocation5 + $0x14] ss:$8 sps:$4 sm:$0xff]  }
  0x56   : > { %2247 = vsyncadd (%p2650_p2), [#allocation6], 4294963200  ;;  %756 = vmatprep.subr.bf16.mxu0 %v1994_v0  ;;  %1901 = vmatprep.subr.bf16.mxu1 %v1994_v0  ;;  %v1999_v3 = vld [vmem:[#allocation5 + $0x10] ss:$8 sps:$4 sm:$0xff]   ;;  %v2000_v4 = vld [vmem:[#allocation5 + $0x24] ss:$8 sps:$4 sm:$0xff]  }
  0x57   : > { %757 = vmatpush1.bf16.msra.mxu0 %v1996_v1  ;;  %1917 = vmatpush1.bf16.msra.mxu1 %v1996_v1  ;;  %v2002_v5 = vld [vmem:[#allocation5 + $0x20] ss:$8 sps:$4 sm:$0xff]   ;;  %v2003_v6 = vld [vmem:[#allocation5 + $0x34] ss:$8 sps:$4 sm:$0xff]   ;;  %v2005_v7 = vld [vmem:[#allocation5 + $0x30] ss:$8 sps:$4 sm:$0xff]  }
  0x58   : > { %758 = vmatprep.subr.bf16.mxu0 %v1997_v2  ;;  %1902 = vmatprep.subr.bf16.mxu1 %v1997_v2  ;;  %v2006_v8 = vld [vmem:[#allocation5 + $0x44] ss:$8 sps:$4 sm:$0xff]   ;;  %v2008_v9 = vld [vmem:[#allocation5 + $0x40] ss:$8 sps:$4 sm:$0xff]   ;;  %v2009_v10 = vld [vmem:[#allocation5 + $0x54] ss:$8 sps:$4 sm:$0xff]  }
  0x59   : > { %v2011_v11 = vld [vmem:[#allocation5 + $0x50] ss:$8 sps:$4 sm:$0xff]   ;;  %v2012_v12 = vld [vmem:[#allocation5 + $0x64] ss:$8 sps:$4 sm:$0xff]   ;;  %v2014_v14 = vld [vmem:[#allocation5 + $0x60] ss:$8 sps:$4 sm:$0xff]  }
  0x5a   : > { %v2044_v13 = vld [vmem:[%s2441_s23 + $0x4] ss:$8 sps:$4 sm:$0xff]   ;;  %v2015_v16 = vld [vmem:[#allocation5 + $0x74] ss:$8 sps:$4 sm:$0xff]   ;;  %v2017_v17 = vld [vmem:[#allocation5 + $0x70] ss:$8 sps:$4 sm:$0xff]  }
  0x5b   : > { %759 = vmatpush1.bf16.msra.mxu0 %v1999_v3  ;;  %1918 = vmatpush1.bf16.msra.mxu1 %v1999_v3  ;;  %v2047_v15 = vld [vmem:[%s2441_s23 + $0x104] ss:$8 sps:$4 sm:$0xff]   ;;  %v2020_v19 = vld [vmem:[#allocation5 + $0x80] ss:$8 sps:$4 sm:$0xff]   ;;  %v2021_v20 = vld [vmem:[#allocation5 + $0x94] ss:$8 sps:$4 sm:$0xff]  }
  0x5c   : > { %760 = vmatprep.subr.bf16.mxu0 %v2000_v4  ;;  %1903 = vmatprep.subr.bf16.mxu1 %v2000_v4  ;;  %v2018_v18 = vld [vmem:[#allocation5 + $0x84] ss:$8 sps:$4 sm:$0xff]   ;;  %v2023_v21 = vld [vmem:[#allocation5 + $0x90] ss:$8 sps:$4 sm:$0xff]   ;;  %v2026_v23 = vld [vmem:[#allocation5 + $0xa0] ss:$8 sps:$4 sm:$0xff]  }
  0x5d   : > { %788 = vmatprep.mubr.bf16.mxu0 %v2044_v13  ;;  %948 = vmatprep.mubr.bf16.mxu1 %v2047_v15  ;;  %v2024_v22 = vld [vmem:[#allocation5 + $0xa4] ss:$8 sps:$4 sm:$0xff]   ;;  %v2027_v24 = vld [vmem:[#allocation5 + $0xb4] ss:$8 sps:$4 sm:$0xff]   ;;  %v2029_v25 = vld [vmem:[#allocation5 + $0xb0] ss:$8 sps:$4 sm:$0xff]  }
  0x5e   : > { %v2030_v26 = vld [vmem:[#allocation5 + $0xc4] ss:$8 sps:$4 sm:$0xff]   ;;  %v2032_v27 = vld [vmem:[#allocation5 + $0xc0] ss:$8 sps:$4 sm:$0xff]   ;;  %v2033_v28 = vld [vmem:[#allocation5 + $0xd4] ss:$8 sps:$4 sm:$0xff]  }
  0x5f   : > { %761 = vmatpush1.bf16.msra.mxu0 %v2002_v5  ;;  %1919 = vmatpush1.bf16.msra.mxu1 %v2002_v5  ;;  %v2035_v29 = vld [vmem:[#allocation5 + $0xd0] ss:$8 sps:$4 sm:$0xff]   ;;  %v2036_v30 = vld [vmem:[#allocation5 + $0xe4] ss:$8 sps:$4 sm:$0xff]   ;;  %v2038_v31 = vld [vmem:[#allocation5 + $0xe0] ss:$8 sps:$4 sm:$0xff]  }
  0x60   : > { %762 = vmatprep.subr.bf16.mxu0 %v2003_v6  ;;  %1904 = vmatprep.subr.bf16.mxu1 %v2003_v6  ;;  %v2039_v32 = vld [vmem:[#allocation5 + $0xf4] ss:$8 sps:$4 sm:$0xff]   ;;  %v2041_v33 = vld [vmem:[#allocation5 + $0xf0] ss:$8 sps:$4 sm:$0xff]   ;;  %v2042_v34 = vld [vmem:[%s2441_s23] ss:$8 sps:$4 sm:$0xff]  }
  0x61   : > { %v2045_v35 = vld [vmem:[%s2441_s23 + $0x100] ss:$8 sps:$4 sm:$0xff]   ;;  %v2048_v36 = vld [vmem:[%s2441_s23 + $0x14] ss:$8 sps:$4 sm:$0xff]   ;;  %v2052_v38 = vld [vmem:[%s2441_s23 + $0x10] ss:$8 sps:$4 sm:$0xff]  }
  0x62   : > { %v2050_v37 = vld [vmem:[%s2441_s23 + $0x114] ss:$8 sps:$4 sm:$0xff]   ;;  %v2053_v39 = vld [vmem:[%s2441_s23 + $0x110] ss:$8 sps:$4 sm:$0xff]   ;;  %v2054_v40 = vld [vmem:[%s2441_s23 + $0x24] ss:$8 sps:$4 sm:$0xff]  }
  0x63   : > { %763 = vmatpush1.bf16.msra.mxu0 %v2005_v7  ;;  %1920 = vmatpush1.bf16.msra.mxu1 %v2005_v7  ;;  %v2056_v41 = vld [vmem:[%s2441_s23 + $0x124] ss:$8 sps:$4 sm:$0xff]   ;;  %v2058_v42 = vld [vmem:[%s2441_s23 + $0x20] ss:$8 sps:$4 sm:$0xff]   ;;  %v2060_v44 = vld [vmem:[%s2441_s23 + $0x34] ss:$8 sps:$4 sm:$0xff]  }
  0x64   : > { %764 = vmatprep.subr.bf16.mxu0 %v2006_v8  ;;  %1905 = vmatprep.subr.bf16.mxu1 %v2006_v8  ;;  %v2059_v43 = vld [vmem:[%s2441_s23 + $0x120] ss:$8 sps:$4 sm:$0xff]   ;;  %v2062_v45 = vld [vmem:[%s2441_s23 + $0x134] ss:$8 sps:$4 sm:$0xff]   ;;  %v2064_v46 = vld [vmem:[%s2441_s23 + $0x30] ss:$8 sps:$4 sm:$0xff]  }
  0x65   : > { %v2065_v47 = vld [vmem:[%s2441_s23 + $0x130] ss:$8 sps:$4 sm:$0xff]   ;;  %v2066_v48 = vld [vmem:[%s2441_s23 + $0x44] ss:$8 sps:$4 sm:$0xff]   ;;  %v2070_v50 = vld [vmem:[%s2441_s23 + $0x40] ss:$8 sps:$4 sm:$0xff]  }
  0x66   : > { %v2068_v49 = vld [vmem:[%s2441_s23 + $0x144] ss:$8 sps:$4 sm:$0xff]   ;;  %v2071_v51 = vld [vmem:[%s2441_s23 + $0x140] ss:$8 sps:$4 sm:$0xff]   ;;  %v2072_v52 = vld [vmem:[%s2441_s23 + $0x54] ss:$8 sps:$4 sm:$0xff]  }
  0x67   : > { %765 = vmatpush1.bf16.msra.mxu0 %v2008_v9  ;;  %1921 = vmatpush1.bf16.msra.mxu1 %v2008_v9  ;;  %v2074_v53 = vld [vmem:[%s2441_s23 + $0x154] ss:$8 sps:$4 sm:$0xff]   ;;  %v2076_v54 = vld [vmem:[%s2441_s23 + $0x50] ss:$8 sps:$4 sm:$0xff]   ;;  %v2078_v56 = vld [vmem:[%s2441_s23 + $0x64] ss:$8 sps:$4 sm:$0xff]  }
  0x68   : > { %766 = vmatprep.subr.bf16.mxu0 %v2009_v10  ;;  %1906 = vmatprep.subr.bf16.mxu1 %v2009_v10  ;;  %v2077_v55 = vld [vmem:[%s2441_s23 + $0x150] ss:$8 sps:$4 sm:$0xff]   ;;  %v2080_v57 = vld [vmem:[%s2441_s23 + $0x164] ss:$8 sps:$4 sm:$0xff]   ;;  %v2082_v58 = vld [vmem:[%s2441_s23 + $0x60] ss:$8 sps:$4 sm:$0xff]  }
  0x69   : > { %v2083_v59 = vld [vmem:[%s2441_s23 + $0x160] ss:$8 sps:$4 sm:$0xff]   ;;  %v2084_v60 = vld [vmem:[%s2441_s23 + $0x74] ss:$8 sps:$4 sm:$0xff]   ;;  %v2088_v62 = vld [vmem:[%s2441_s23 + $0x70] ss:$8 sps:$4 sm:$0xff]  }
  0x6a   : > { %v2086_v61 = vld [vmem:[%s2441_s23 + $0x174] ss:$8 sps:$4 sm:$0xff]   ;;  %v2089_v63 = vld [vmem:[%s2441_s23 + $0x170] ss:$8 sps:$4 sm:$0xff]   ;;  %v2090_v0 = vld [vmem:[%s2441_s23 + $0x84] ss:$8 sps:$4 sm:$0xff]  }
  0x6b   : > { %767 = vmatpush1.bf16.msra.mxu0 %v2011_v11  ;;  %1922 = vmatpush1.bf16.msra.mxu1 %v2011_v11  ;;  %v2092_v1 = vld [vmem:[%s2441_s23 + $0x184] ss:$8 sps:$4 sm:$0xff]   ;;  %v2094_v2 = vld [vmem:[%s2441_s23 + $0x80] ss:$8 sps:$4 sm:$0xff]   ;;  %v2096_v4 = vld [vmem:[%s2441_s23 + $0x94] ss:$8 sps:$4 sm:$0xff]  }
  0x6c   : > { %768 = vmatprep.subr.bf16.mxu0 %v2012_v12  ;;  %1907 = vmatprep.subr.bf16.mxu1 %v2012_v12  ;;  %v2095_v3 = vld [vmem:[%s2441_s23 + $0x180] ss:$8 sps:$4 sm:$0xff]   ;;  %v2098_v5 = vld [vmem:[%s2441_s23 + $0x194] ss:$8 sps:$4 sm:$0xff]   ;;  %v2100_v6 = vld [vmem:[%s2441_s23 + $0x90] ss:$8 sps:$4 sm:$0xff]  }
  0x6d   : > { %v2101_v7 = vld [vmem:[%s2441_s23 + $0x190] ss:$8 sps:$4 sm:$0xff]   ;;  %v2102_v8 = vld [vmem:[%s2441_s23 + $0xa4] ss:$8 sps:$4 sm:$0xff]   ;;  %v2106_v10 = vld [vmem:[%s2441_s23 + $0xa0] ss:$8 sps:$4 sm:$0xff]  }
  0x6e   : > { %v2104_v9 = vld [vmem:[%s2441_s23 + $0x1a4] ss:$8 sps:$4 sm:$0xff]   ;;  %v2107_v11 = vld [vmem:[%s2441_s23 + $0x1a0] ss:$8 sps:$4 sm:$0xff]   ;;  %v2108_v12 = vld [vmem:[%s2441_s23 + $0xb4] ss:$8 sps:$4 sm:$0xff]  }
  0x6f   : > { %769 = vmatpush1.bf16.msra.mxu0 %v2014_v14  ;;  %1923 = vmatpush1.bf16.msra.mxu1 %v2014_v14  ;;  %v2110_v13 = vld [vmem:[%s2441_s23 + $0x1b4] ss:$8 sps:$4 sm:$0xff]   ;;  %v2112_v14 = vld [vmem:[%s2441_s23 + $0xb0] ss:$8 sps:$4 sm:$0xff]   ;;  %s2517_s15 = scalar_lea.vmem [#allocation7], %s1664_s29  ;;  %s1900_s17 = sshll.u32 %s2311_s13, 13 }
  0x70   : > { %770 = vmatprep.subr.bf16.mxu0 %v2015_v16  ;;  %1908 = vmatprep.subr.bf16.mxu1 %v2015_v16  ;;  %v2113_v15 = vld [vmem:[%s2441_s23 + $0x1b0] ss:$8 sps:$4 sm:$0xff]   ;;  %v2114_v16 = vld [vmem:[%s2441_s23 + $0xc4] ss:$8 sps:$4 sm:$0xff]   ;;  %s1572_s4 = sshll.u32 %s2517_s15, 4  ;;  %s2584_s22 = scalar_lea.hbm %s2636_s2, %s1900_s17  ;;  %s2586_s4 = int_to_ptr.vmem [resolvable:$true] %s1572_s4 }
  0x71   : > { %s1558_s13 = scalar_lea.sflag [#allocation4], %s2435_s19  ;;  %s2196_s28 = scalar_lea.vmem %s2586_s4, 8192 }
  0x72   : > { %p2197_p4 = scmp.ne.s32.totalorder %s2586_s4, %s2196_s28  ;;  %s2272_s3 = smov [#allocation7]  }
  0x73   : > { %771 = vmatpush1.bf16.msra.mxu0 %v2017_v17  ;;  %1924 = vmatpush1.bf16.msra.mxu1 %v2017_v17  ;;  %v2116_v17 = vld [vmem:[%s2441_s23 + $0x1c4] ss:$8 sps:$4 sm:$0xff]   ;;  %s2200_s6 = sshll.u32 %s2272_s3, 4  ;;  %s2201_s6 = int_to_ptr.vmem [resolvable:$false] %s2200_s6 }
  0x74   : > { %772 = vmatprep.subr.bf16.mxu0 %v2018_v18  ;;  %1909 = vmatprep.subr.bf16.mxu1 %v2018_v18  ;;  %v2118_v18 = vld [vmem:[%s2441_s23 + $0xc0] ss:$8 sps:$4 sm:$0xff]   ;;  %p2198_p6 = pnand %p2197_p4, %p2384_p12  ;;  %s2202_s7 = scalar_lea.vmem %s2201_s6, 16384 }
  0x75   : > { %p2203_p10 = scmp.lt.s32.totalorder %s2586_s4, %s2201_s6  ;;  %p2204_p13 = scmp.lt.s32.totalorder %s2202_s7, %s2196_s28 }
  0x76   : > { %p2199_p8 = pneg %p2198_p6 }
  0x77   : > { %773 = vmatpush1.bf16.msra.mxu0 %v2020_v19  ;;  %1925 = vmatpush1.bf16.msra.mxu1 %v2020_v19  ;;  %v2119_v19 = vld [vmem:[%s2441_s23 + $0x1c0] ss:$8 sps:$4 sm:$0xff]   ;;  %p2205_p3 = por %p2204_p13, %p2203_p10 }
  0x78   : > { %774 = vmatprep.subr.bf16.mxu0 %v2021_v20  ;;  %1910 = vmatprep.subr.bf16.mxu1 %v2021_v20  ;;  %v2120_v20 = vld [vmem:[%s2441_s23 + $0xd4] ss:$8 sps:$4 sm:$0xff]  }
  0x79   : > { %p2206_p7 = pnand %p2205_p3, %p2199_p8 }
  0x7b   : > { %775 = vmatpush1.bf16.msra.mxu0 %v2023_v21  ;;  %1926 = vmatpush1.bf16.msra.mxu1 %v2023_v21  ;;  %v2122_v21 = vld [vmem:[%s2441_s23 + $0x1d4] ss:$8 sps:$4 sm:$0xff]  }
  0x7c   : > { %776 = vmatprep.subr.bf16.mxu0 %v2024_v22  ;;  %1911 = vmatprep.subr.bf16.mxu1 %v2024_v22  ;;  %v2124_v22 = vld [vmem:[%s2441_s23 + $0xd0] ss:$8 sps:$4 sm:$0xff]  }
  0x7f   : > { %777 = vmatpush1.bf16.msra.mxu0 %v2026_v23  ;;  %1927 = vmatpush1.bf16.msra.mxu1 %v2026_v23  ;;  %v2125_v23 = vld [vmem:[%s2441_s23 + $0x1d0] ss:$8 sps:$4 sm:$0xff]  }
  0x80   : > { %778 = vmatprep.subr.bf16.mxu0 %v2027_v24  ;;  %1912 = vmatprep.subr.bf16.mxu1 %v2027_v24  ;;  %v2126_v24 = vld [vmem:[%s2441_s23 + $0xe4] ss:$8 sps:$4 sm:$0xff]  }
  0x83   : > { %779 = vmatpush1.bf16.msra.mxu0 %v2029_v25  ;;  %1928 = vmatpush1.bf16.msra.mxu1 %v2029_v25  ;;  %v2128_v25 = vld [vmem:[%s2441_s23 + $0x1e4] ss:$8 sps:$4 sm:$0xff]  }
  0x84   : > { %780 = vmatprep.subr.bf16.mxu0 %v2030_v26  ;;  %1913 = vmatprep.subr.bf16.mxu1 %v2030_v26  ;;  %v2130_v26 = vld [vmem:[%s2441_s23 + $0xe0] ss:$8 sps:$4 sm:$0xff]  }
  0x87   : > { %781 = vmatpush1.bf16.msra.mxu0 %v2032_v27  ;;  %1929 = vmatpush1.bf16.msra.mxu1 %v2032_v27  ;;  %v2131_v27 = vld [vmem:[%s2441_s23 + $0x1e0] ss:$8 sps:$4 sm:$0xff]  }
  0x88   : > { %782 = vmatprep.subr.bf16.mxu0 %v2033_v28  ;;  %1914 = vmatprep.subr.bf16.mxu1 %v2033_v28  ;;  %v2132_v28 = vld [vmem:[%s2441_s23 + $0xf4] ss:$8 sps:$4 sm:$0xff]  }
  0x8b   : > { %783 = vmatpush1.bf16.msra.mxu0 %v2035_v29  ;;  %1930 = vmatpush1.bf16.msra.mxu1 %v2035_v29  ;;  %v2134_v29 = vld [vmem:[%s2441_s23 + $0x1f4] ss:$8 sps:$4 sm:$0xff]  }
  0x8c   : > { %784 = vmatprep.subr.bf16.mxu0 %v2036_v30  ;;  %1915 = vmatprep.subr.bf16.mxu1 %v2036_v30  ;;  %v2136_v30 = vld [vmem:[%s2441_s23 + $0xf0] ss:$8 sps:$4 sm:$0xff]  }
  0x8f   : > { %785 = vmatpush1.bf16.msra.mxu0 %v2038_v31  ;;  %1931 = vmatpush1.bf16.msra.mxu1 %v2038_v31  ;;  %v2137_v31 = vld [vmem:[%s2441_s23 + $0x1f0] ss:$8 sps:$4 sm:$0xff]  }
  0x90   : > { %786 = vmatprep.subr.bf16.mxu0 %v2039_v32  ;;  %1916 = vmatprep.subr.bf16.mxu1 %v2039_v32 }
  0x93   : > { %787 = vmatpush1.bf16.msra.mxu0 %v2041_v33  ;;  %1932 = vmatpush1.bf16.msra.mxu1 %v2041_v33 }
  0x96   : > { %789 = vmatmul.mubr.bf16.vlgmr.msra.gmra.mrb[0].mxu0 %v2042_v34  ;;  %949 = vmatmul.mubr.bf16.vlgmr.msra.gmra.mrb[0].mxu1 %v2045_v35 }
  0x97   : > { %798 = vmatprep.mubr.bf16.mxu0 %v2048_v36  ;;  %958 = vmatprep.mubr.bf16.mxu1 %v2050_v37 }
  0x9e   : > { %799 = vmatmul.mubr.bf16.gmra.mrb[4].mxu0 %v2052_v38  ;;  %959 = vmatmul.mubr.bf16.gmra.mrb[4].mxu1 %v2053_v39 }
  0x9f   : > { %808 = vmatprep.mubr.bf16.mxu0 %v2054_v40  ;;  %968 = vmatprep.mubr.bf16.mxu1 %v2056_v41 }
  0xa6   : > { %809 = vmatmul.mubr.bf16.gmra.mrb[8].mxu0 %v2058_v42  ;;  %969 = vmatmul.mubr.bf16.gmra.mrb[8].mxu1 %v2059_v43 }
  0xa7   : > { %818 = vmatprep.mubr.bf16.mxu0 %v2060_v44  ;;  %978 = vmatprep.mubr.bf16.mxu1 %v2062_v45 }
  0xae   : > { %819 = vmatmul.mubr.bf16.gmra.mrb[12].mxu0 %v2064_v46  ;;  %979 = vmatmul.mubr.bf16.gmra.mrb[12].mxu1 %v2065_v47 }
  0xaf   : > { %828 = vmatprep.mubr.bf16.mxu0 %v2066_v48  ;;  %988 = vmatprep.mubr.bf16.mxu1 %v2068_v49 }
  0xb6   : > { %829 = vmatmul.mubr.bf16.gmra.mrb[16].mxu0 %v2070_v50  ;;  %989 = vmatmul.mubr.bf16.gmra.mrb[16].mxu1 %v2071_v51 }
  0xb7   : > { %838 = vmatprep.mubr.bf16.mxu0 %v2072_v52  ;;  %998 = vmatprep.mubr.bf16.mxu1 %v2074_v53 }
  0xbe   : > { %839 = vmatmul.mubr.bf16.gmra.mrb[20].mxu0 %v2076_v54  ;;  %999 = vmatmul.mubr.bf16.gmra.mrb[20].mxu1 %v2077_v55 }
  0xbf   : > { %848 = vmatprep.mubr.bf16.mxu0 %v2078_v56  ;;  %1008 = vmatprep.mubr.bf16.mxu1 %v2080_v57 }
  0xc6   : > { %849 = vmatmul.mubr.bf16.gmra.mrb[24].mxu0 %v2082_v58  ;;  %1009 = vmatmul.mubr.bf16.gmra.mrb[24].mxu1 %v2083_v59 }
  0xc7   : > { %858 = vmatprep.mubr.bf16.mxu0 %v2084_v60  ;;  %1018 = vmatprep.mubr.bf16.mxu1 %v2086_v61 }
  0xce   : > { %859 = vmatmul.mubr.bf16.gmra.mrb[28].mxu0 %v2088_v62  ;;  %1019 = vmatmul.mubr.bf16.gmra.mrb[28].mxu1 %v2089_v63 }
  0xcf   : > { %868 = vmatprep.mubr.bf16.mxu0 %v2090_v0  ;;  %1028 = vmatprep.mubr.bf16.mxu1 %v2092_v1 }
  0xd6   : > { %869 = vmatmul.mubr.bf16.gmra.mrb[32].mxu0 %v2094_v2  ;;  %1029 = vmatmul.mubr.bf16.gmra.mrb[32].mxu1 %v2095_v3 }
  0xd7   : > { %878 = vmatprep.mubr.bf16.mxu0 %v2096_v4  ;;  %1038 = vmatprep.mubr.bf16.mxu1 %v2098_v5 }
  0xde   : > { %879 = vmatmul.mubr.bf16.gmra.mrb[36].mxu0 %v2100_v6  ;;  %1039 = vmatmul.mubr.bf16.gmra.mrb[36].mxu1 %v2101_v7 }
  0xdf   : > { %888 = vmatprep.mubr.bf16.mxu0 %v2102_v8  ;;  %1048 = vmatprep.mubr.bf16.mxu1 %v2104_v9 }
  0xe6   : > { %889 = vmatmul.mubr.bf16.gmra.mrb[40].mxu0 %v2106_v10  ;;  %1049 = vmatmul.mubr.bf16.gmra.mrb[40].mxu1 %v2107_v11 }
  0xe7   : > { %898 = vmatprep.mubr.bf16.mxu0 %v2108_v12  ;;  %1058 = vmatprep.mubr.bf16.mxu1 %v2110_v13 }
  0xee   : > { %899 = vmatmul.mubr.bf16.gmra.mrb[44].mxu0 %v2112_v14  ;;  %1059 = vmatmul.mubr.bf16.gmra.mrb[44].mxu1 %v2113_v15 }
  0xef   : > { %908 = vmatprep.mubr.bf16.mxu0 %v2114_v16  ;;  %1068 = vmatprep.mubr.bf16.mxu1 %v2116_v17 }
  0xf6   : > { %909 = vmatmul.mubr.bf16.gmra.mrb[48].mxu0 %v2118_v18  ;;  %1069 = vmatmul.mubr.bf16.gmra.mrb[48].mxu1 %v2119_v19 }
  0xf7   : > { %918 = vmatprep.mubr.bf16.mxu0 %v2120_v20  ;;  %1078 = vmatprep.mubr.bf16.mxu1 %v2122_v21 }
  0xfe   : > { %919 = vmatmul.mubr.bf16.gmra.mrb[52].mxu0 %v2124_v22  ;;  %1079 = vmatmul.mubr.bf16.gmra.mrb[52].mxu1 %v2125_v23 }
  0xff   : > { %928 = vmatprep.mubr.bf16.mxu0 %v2126_v24  ;;  %1088 = vmatprep.mubr.bf16.mxu1 %v2128_v25 }
 0x106   : > { %929 = vmatmul.mubr.bf16.gmra.mrb[56].mxu0 %v2130_v26  ;;  %1089 = vmatmul.mubr.bf16.gmra.mrb[56].mxu1 %v2131_v27 }
 0x107   : > { %938 = vmatprep.mubr.bf16.mxu0 %v2132_v28  ;;  %1098 = vmatprep.mubr.bf16.mxu1 %v2134_v29 }
 0x10e   : > { %939 = vmatmul.mubr.bf16.gmra.mrb[60].mxu0 %v2136_v30  ;;  %1099 = vmatmul.mubr.bf16.gmra.mrb[60].mxu1 %v2137_v31 }
 0x169   : > { %v790_v32 = vpop.f32.mrb[0].mxu0  ;;  %v950_v33 = vpop.f32.mrb[0].mxu1 }
 0x16a   : > { %v792_v34 = vpop.f32.mrb[1].mxu0  ;;  %v952_v35 = vpop.f32.mrb[1].mxu1 }
 0x16b   : > { %v1835_v36 = vpack.c.bf16 %v792_v34, %v790_v32  ;;  %v1867_v37 = vpack.c.bf16 %v952_v35, %v950_v33  ;;  %v794_v38 = vpop.f32.mrb[2].mxu0  ;;  %v954_v39 = vpop.f32.mrb[2].mxu1 }
 0x16c   : > { %v796_v40 = vpop.f32.mrb[3].mxu0  ;;  %v956_v41 = vpop.f32.mrb[3].mxu1 }
 0x16d   : > { %1493 = vst [vmem:[%s2517_s15] sm:$0xff] %v1835_v36  ;;  %1525 = vst [vmem:[%s2517_s15 + $0x100] sm:$0xff] %v1867_v37  ;;  %v1836_v42 = vpack.c.bf16 %v796_v40, %v794_v38  ;;  %v1868_v43 = vpack.c.bf16 %v956_v41, %v954_v39 }
 0x16f   : > { %1494 = vst [vmem:[%s2517_s15 + $0x8] sm:$0xff] %v1836_v42  ;;  %1526 = vst [vmem:[%s2517_s15 + $0x108] sm:$0xff] %v1868_v43 }
 0x171   : > { %v800_v44 = vpop.f32.mrb[4].mxu0  ;;  %v960_v45 = vpop.f32.mrb[4].mxu1 }
 0x172   : > { %v802_v46 = vpop.f32.mrb[5].mxu0  ;;  %v962_v47 = vpop.f32.mrb[5].mxu1 }
 0x173   : > { %v1837_v48 = vpack.c.bf16 %v802_v46, %v800_v44  ;;  %v1869_v49 = vpack.c.bf16 %v962_v47, %v960_v45  ;;  %v804_v50 = vpop.f32.mrb[6].mxu0  ;;  %v964_v51 = vpop.f32.mrb[6].mxu1 }
 0x174   : > { %v806_v52 = vpop.f32.mrb[7].mxu0  ;;  %v966_v53 = vpop.f32.mrb[7].mxu1 }
 0x175   : > { %1495 = vst [vmem:[%s2517_s15 + $0x10] sm:$0xff] %v1837_v48  ;;  %1527 = vst [vmem:[%s2517_s15 + $0x110] sm:$0xff] %v1869_v49  ;;  %v1838_v54 = vpack.c.bf16 %v806_v52, %v804_v50  ;;  %v1870_v55 = vpack.c.bf16 %v966_v53, %v964_v51 }
 0x177   : > { %1496 = vst [vmem:[%s2517_s15 + $0x18] sm:$0xff] %v1838_v54  ;;  %1528 = vst [vmem:[%s2517_s15 + $0x118] sm:$0xff] %v1870_v55 }
 0x179   : > { %v810_v56 = vpop.f32.mrb[8].mxu0  ;;  %v970_v57 = vpop.f32.mrb[8].mxu1 }
 0x17a   : > { %v812_v58 = vpop.f32.mrb[9].mxu0  ;;  %v972_v59 = vpop.f32.mrb[9].mxu1 }
 0x17b   : > { %v1839_v60 = vpack.c.bf16 %v812_v58, %v810_v56  ;;  %v1871_v61 = vpack.c.bf16 %v972_v59, %v970_v57  ;;  %v814_v62 = vpop.f32.mrb[10].mxu0  ;;  %v974_v63 = vpop.f32.mrb[10].mxu1 }
 0x17c   : > { %v816_v0 = vpop.f32.mrb[11].mxu0  ;;  %v976_v1 = vpop.f32.mrb[11].mxu1 }
 0x17d   : > { %1497 = vst [vmem:[%s2517_s15 + $0x20] sm:$0xff] %v1839_v60  ;;  %1529 = vst [vmem:[%s2517_s15 + $0x120] sm:$0xff] %v1871_v61  ;;  %v1840_v2 = vpack.c.bf16 %v816_v0, %v814_v62  ;;  %v1872_v3 = vpack.c.bf16 %v976_v1, %v974_v63 }
 0x17f   : > { %1498 = vst [vmem:[%s2517_s15 + $0x28] sm:$0xff] %v1840_v2  ;;  %1530 = vst [vmem:[%s2517_s15 + $0x128] sm:$0xff] %v1872_v3 }
 0x181   : > { %v820_v4 = vpop.f32.mrb[12].mxu0  ;;  %v980_v5 = vpop.f32.mrb[12].mxu1 }
 0x182   : > { %v822_v6 = vpop.f32.mrb[13].mxu0  ;;  %v982_v7 = vpop.f32.mrb[13].mxu1 }
 0x183   : > { %v1841_v8 = vpack.c.bf16 %v822_v6, %v820_v4  ;;  %v1873_v9 = vpack.c.bf16 %v982_v7, %v980_v5  ;;  %v824_v10 = vpop.f32.mrb[14].mxu0  ;;  %v984_v11 = vpop.f32.mrb[14].mxu1 }
 0x184   : > { %v826_v12 = vpop.f32.mrb[15].mxu0  ;;  %v986_v13 = vpop.f32.mrb[15].mxu1 }
 0x185   : > { %1499 = vst [vmem:[%s2517_s15 + $0x30] sm:$0xff] %v1841_v8  ;;  %1531 = vst [vmem:[%s2517_s15 + $0x130] sm:$0xff] %v1873_v9  ;;  %v1842_v14 = vpack.c.bf16 %v826_v12, %v824_v10  ;;  %v1874_v15 = vpack.c.bf16 %v986_v13, %v984_v11 }
 0x187   : > { %1500 = vst [vmem:[%s2517_s15 + $0x38] sm:$0xff] %v1842_v14  ;;  %1532 = vst [vmem:[%s2517_s15 + $0x138] sm:$0xff] %v1874_v15 }
 0x189   : > { %v830_v16 = vpop.f32.mrb[16].mxu0  ;;  %v990_v17 = vpop.f32.mrb[16].mxu1 }
 0x18a   : > { %v832_v18 = vpop.f32.mrb[17].mxu0  ;;  %v992_v19 = vpop.f32.mrb[17].mxu1 }
 0x18b   : > { %v1843_v20 = vpack.c.bf16 %v832_v18, %v830_v16  ;;  %v1875_v21 = vpack.c.bf16 %v992_v19, %v990_v17  ;;  %v834_v22 = vpop.f32.mrb[18].mxu0  ;;  %v994_v23 = vpop.f32.mrb[18].mxu1 }
 0x18c   : > { %v836_v24 = vpop.f32.mrb[19].mxu0  ;;  %v996_v25 = vpop.f32.mrb[19].mxu1 }
 0x18d   : > { %1501 = vst [vmem:[%s2517_s15 + $0x40] sm:$0xff] %v1843_v20  ;;  %1533 = vst [vmem:[%s2517_s15 + $0x140] sm:$0xff] %v1875_v21  ;;  %v1844_v26 = vpack.c.bf16 %v836_v24, %v834_v22  ;;  %v1876_v27 = vpack.c.bf16 %v996_v25, %v994_v23 }
 0x18f   : > { %1502 = vst [vmem:[%s2517_s15 + $0x48] sm:$0xff] %v1844_v26  ;;  %1534 = vst [vmem:[%s2517_s15 + $0x148] sm:$0xff] %v1876_v27 }
 0x191   : > { %v840_v28 = vpop.f32.mrb[20].mxu0  ;;  %v1000_v29 = vpop.f32.mrb[20].mxu1 }
 0x192   : > { %v842_v30 = vpop.f32.mrb[21].mxu0  ;;  %v1002_v31 = vpop.f32.mrb[21].mxu1 }
 0x193   : > { %v1845_v32 = vpack.c.bf16 %v842_v30, %v840_v28  ;;  %v1877_v33 = vpack.c.bf16 %v1002_v31, %v1000_v29  ;;  %v844_v34 = vpop.f32.mrb[22].mxu0  ;;  %v1004_v35 = vpop.f32.mrb[22].mxu1 }
 0x194   : > { %v846_v36 = vpop.f32.mrb[23].mxu0  ;;  %v1006_v37 = vpop.f32.mrb[23].mxu1 }
 0x195   : > { %1503 = vst [vmem:[%s2517_s15 + $0x50] sm:$0xff] %v1845_v32  ;;  %1535 = vst [vmem:[%s2517_s15 + $0x150] sm:$0xff] %v1877_v33  ;;  %v1846_v38 = vpack.c.bf16 %v846_v36, %v844_v34  ;;  %v1878_v39 = vpack.c.bf16 %v1006_v37, %v1004_v35 }
 0x197   : > { %1504 = vst [vmem:[%s2517_s15 + $0x58] sm:$0xff] %v1846_v38  ;;  %1536 = vst [vmem:[%s2517_s15 + $0x158] sm:$0xff] %v1878_v39 }
 0x199   : > { %v850_v40 = vpop.f32.mrb[24].mxu0  ;;  %v1010_v41 = vpop.f32.mrb[24].mxu1 }
 0x19a   : > { %v852_v42 = vpop.f32.mrb[25].mxu0  ;;  %v1012_v43 = vpop.f32.mrb[25].mxu1 }
 0x19b   : > { %v1847_v44 = vpack.c.bf16 %v852_v42, %v850_v40  ;;  %v1879_v45 = vpack.c.bf16 %v1012_v43, %v1010_v41  ;;  %v854_v46 = vpop.f32.mrb[26].mxu0  ;;  %v1014_v47 = vpop.f32.mrb[26].mxu1 }
 0x19c   : > { %v856_v48 = vpop.f32.mrb[27].mxu0  ;;  %v1016_v49 = vpop.f32.mrb[27].mxu1 }
 0x19d   : > { %1505 = vst [vmem:[%s2517_s15 + $0x60] sm:$0xff] %v1847_v44  ;;  %1537 = vst [vmem:[%s2517_s15 + $0x160] sm:$0xff] %v1879_v45  ;;  %v1848_v50 = vpack.c.bf16 %v856_v48, %v854_v46  ;;  %v1880_v51 = vpack.c.bf16 %v1016_v49, %v1014_v47 }
 0x19f   : > { %1506 = vst [vmem:[%s2517_s15 + $0x68] sm:$0xff] %v1848_v50  ;;  %1538 = vst [vmem:[%s2517_s15 + $0x168] sm:$0xff] %v1880_v51 }
 0x1a1   : > { %v860_v52 = vpop.f32.mrb[28].mxu0  ;;  %v1020_v53 = vpop.f32.mrb[28].mxu1 }
 0x1a2   : > { %v862_v54 = vpop.f32.mrb[29].mxu0  ;;  %v1022_v55 = vpop.f32.mrb[29].mxu1 }
 0x1a3   : > { %v1849_v56 = vpack.c.bf16 %v862_v54, %v860_v52  ;;  %v1881_v57 = vpack.c.bf16 %v1022_v55, %v1020_v53  ;;  %v864_v58 = vpop.f32.mrb[30].mxu0  ;;  %v1024_v59 = vpop.f32.mrb[30].mxu1 }
 0x1a4   : > { %v866_v60 = vpop.f32.mrb[31].mxu0  ;;  %v1026_v61 = vpop.f32.mrb[31].mxu1 }
 0x1a5   : > { %1507 = vst [vmem:[%s2517_s15 + $0x70] sm:$0xff] %v1849_v56  ;;  %1539 = vst [vmem:[%s2517_s15 + $0x170] sm:$0xff] %v1881_v57  ;;  %v1850_v62 = vpack.c.bf16 %v866_v60, %v864_v58  ;;  %v1882_v63 = vpack.c.bf16 %v1026_v61, %v1024_v59 }
 0x1a7   : > { %1508 = vst [vmem:[%s2517_s15 + $0x78] sm:$0xff] %v1850_v62  ;;  %1540 = vst [vmem:[%s2517_s15 + $0x178] sm:$0xff] %v1882_v63 }
 0x1a9   : > { %v870_v0 = vpop.f32.mrb[32].mxu0  ;;  %v1030_v1 = vpop.f32.mrb[32].mxu1 }
 0x1aa   : > { %v872_v2 = vpop.f32.mrb[33].mxu0  ;;  %v1032_v3 = vpop.f32.mrb[33].mxu1 }
 0x1ab   : > { %v1851_v4 = vpack.c.bf16 %v872_v2, %v870_v0  ;;  %v1883_v5 = vpack.c.bf16 %v1032_v3, %v1030_v1  ;;  %v874_v6 = vpop.f32.mrb[34].mxu0  ;;  %v1034_v7 = vpop.f32.mrb[34].mxu1 }
 0x1ac   : > { %v876_v8 = vpop.f32.mrb[35].mxu0  ;;  %v1036_v9 = vpop.f32.mrb[35].mxu1 }
 0x1ad   : > { %1509 = vst [vmem:[%s2517_s15 + $0x80] sm:$0xff] %v1851_v4  ;;  %1541 = vst [vmem:[%s2517_s15 + $0x180] sm:$0xff] %v1883_v5  ;;  %v1852_v10 = vpack.c.bf16 %v876_v8, %v874_v6  ;;  %v1884_v11 = vpack.c.bf16 %v1036_v9, %v1034_v7 }
 0x1af   : > { %1510 = vst [vmem:[%s2517_s15 + $0x88] sm:$0xff] %v1852_v10  ;;  %1542 = vst [vmem:[%s2517_s15 + $0x188] sm:$0xff] %v1884_v11 }
 0x1b1   : > { %v880_v12 = vpop.f32.mrb[36].mxu0  ;;  %v1040_v13 = vpop.f32.mrb[36].mxu1 }
 0x1b2   : > { %v882_v14 = vpop.f32.mrb[37].mxu0  ;;  %v1042_v15 = vpop.f32.mrb[37].mxu1 }
 0x1b3   : > { %v1853_v16 = vpack.c.bf16 %v882_v14, %v880_v12  ;;  %v1885_v17 = vpack.c.bf16 %v1042_v15, %v1040_v13  ;;  %v884_v18 = vpop.f32.mrb[38].mxu0  ;;  %v1044_v19 = vpop.f32.mrb[38].mxu1 }
 0x1b4   : > { %v886_v20 = vpop.f32.mrb[39].mxu0  ;;  %v1046_v21 = vpop.f32.mrb[39].mxu1 }
 0x1b5   : > { %1511 = vst [vmem:[%s2517_s15 + $0x90] sm:$0xff] %v1853_v16  ;;  %1543 = vst [vmem:[%s2517_s15 + $0x190] sm:$0xff] %v1885_v17  ;;  %v1854_v22 = vpack.c.bf16 %v886_v20, %v884_v18  ;;  %v1886_v23 = vpack.c.bf16 %v1046_v21, %v1044_v19 }
 0x1b7   : > { %1512 = vst [vmem:[%s2517_s15 + $0x98] sm:$0xff] %v1854_v22  ;;  %1544 = vst [vmem:[%s2517_s15 + $0x198] sm:$0xff] %v1886_v23 }
 0x1b9   : > { %v890_v24 = vpop.f32.mrb[40].mxu0  ;;  %v1050_v25 = vpop.f32.mrb[40].mxu1 }
 0x1ba   : > { %v892_v26 = vpop.f32.mrb[41].mxu0  ;;  %v1052_v27 = vpop.f32.mrb[41].mxu1 }
 0x1bb   : > { %v1855_v28 = vpack.c.bf16 %v892_v26, %v890_v24  ;;  %v1887_v29 = vpack.c.bf16 %v1052_v27, %v1050_v25  ;;  %v894_v30 = vpop.f32.mrb[42].mxu0  ;;  %v1054_v31 = vpop.f32.mrb[42].mxu1 }
 0x1bc   : > { %v896_v32 = vpop.f32.mrb[43].mxu0  ;;  %v1056_v33 = vpop.f32.mrb[43].mxu1 }
 0x1bd   : > { %1513 = vst [vmem:[%s2517_s15 + $0xa0] sm:$0xff] %v1855_v28  ;;  %1545 = vst [vmem:[%s2517_s15 + $0x1a0] sm:$0xff] %v1887_v29  ;;  %v1856_v34 = vpack.c.bf16 %v896_v32, %v894_v30  ;;  %v1888_v35 = vpack.c.bf16 %v1056_v33, %v1054_v31 }
 0x1bf   : > { %1514 = vst [vmem:[%s2517_s15 + $0xa8] sm:$0xff] %v1856_v34  ;;  %1546 = vst [vmem:[%s2517_s15 + $0x1a8] sm:$0xff] %v1888_v35 }
 0x1c1   : > { %v900_v36 = vpop.f32.mrb[44].mxu0  ;;  %v1060_v37 = vpop.f32.mrb[44].mxu1 }
 0x1c2   : > { %v902_v38 = vpop.f32.mrb[45].mxu0  ;;  %v1062_v39 = vpop.f32.mrb[45].mxu1 }
 0x1c3   : > { %v1857_v40 = vpack.c.bf16 %v902_v38, %v900_v36  ;;  %v1889_v41 = vpack.c.bf16 %v1062_v39, %v1060_v37  ;;  %v904_v42 = vpop.f32.mrb[46].mxu0  ;;  %v1064_v43 = vpop.f32.mrb[46].mxu1 }
 0x1c4   : > { %v906_v44 = vpop.f32.mrb[47].mxu0  ;;  %v1066_v45 = vpop.f32.mrb[47].mxu1 }
 0x1c5   : > { %1515 = vst [vmem:[%s2517_s15 + $0xb0] sm:$0xff] %v1857_v40  ;;  %1547 = vst [vmem:[%s2517_s15 + $0x1b0] sm:$0xff] %v1889_v41  ;;  %v1858_v46 = vpack.c.bf16 %v906_v44, %v904_v42  ;;  %v1890_v47 = vpack.c.bf16 %v1066_v45, %v1064_v43 }
 0x1c7   : > { %1516 = vst [vmem:[%s2517_s15 + $0xb8] sm:$0xff] %v1858_v46  ;;  %1548 = vst [vmem:[%s2517_s15 + $0x1b8] sm:$0xff] %v1890_v47 }
 0x1c9   : > { %v910_v48 = vpop.f32.mrb[48].mxu0  ;;  %v1070_v49 = vpop.f32.mrb[48].mxu1 }
 0x1ca   : > { %v912_v50 = vpop.f32.mrb[49].mxu0  ;;  %v1072_v51 = vpop.f32.mrb[49].mxu1 }
 0x1cb   : > { %v1859_v52 = vpack.c.bf16 %v912_v50, %v910_v48  ;;  %v1891_v53 = vpack.c.bf16 %v1072_v51, %v1070_v49  ;;  %v914_v54 = vpop.f32.mrb[50].mxu0  ;;  %v1074_v55 = vpop.f32.mrb[50].mxu1 }
 0x1cc   : > { %v916_v56 = vpop.f32.mrb[51].mxu0  ;;  %v1076_v57 = vpop.f32.mrb[51].mxu1 }
 0x1cd   : > { %1517 = vst [vmem:[%s2517_s15 + $0xc0] sm:$0xff] %v1859_v52  ;;  %1549 = vst [vmem:[%s2517_s15 + $0x1c0] sm:$0xff] %v1891_v53  ;;  %v1860_v58 = vpack.c.bf16 %v916_v56, %v914_v54  ;;  %v1892_v59 = vpack.c.bf16 %v1076_v57, %v1074_v55 }
 0x1cf   : > { %1518 = vst [vmem:[%s2517_s15 + $0xc8] sm:$0xff] %v1860_v58  ;;  %1550 = vst [vmem:[%s2517_s15 + $0x1c8] sm:$0xff] %v1892_v59 }
 0x1d1   : > { %v920_v60 = vpop.f32.mrb[52].mxu0  ;;  %v1080_v61 = vpop.f32.mrb[52].mxu1 }
 0x1d2   : > { %v922_v62 = vpop.f32.mrb[53].mxu0  ;;  %v1082_v63 = vpop.f32.mrb[53].mxu1 }
 0x1d3   : > { %v1861_v0 = vpack.c.bf16 %v922_v62, %v920_v60  ;;  %v1893_v1 = vpack.c.bf16 %v1082_v63, %v1080_v61  ;;  %v924_v2 = vpop.f32.mrb[54].mxu0  ;;  %v1084_v3 = vpop.f32.mrb[54].mxu1 }
 0x1d4   : > { %v926_v4 = vpop.f32.mrb[55].mxu0  ;;  %v1086_v5 = vpop.f32.mrb[55].mxu1 }
 0x1d5   : > { %1519 = vst [vmem:[%s2517_s15 + $0xd0] sm:$0xff] %v1861_v0  ;;  %1551 = vst [vmem:[%s2517_s15 + $0x1d0] sm:$0xff] %v1893_v1  ;;  %v1862_v6 = vpack.c.bf16 %v926_v4, %v924_v2  ;;  %v1894_v7 = vpack.c.bf16 %v1086_v5, %v1084_v3 }
 0x1d7   : > { %1520 = vst [vmem:[%s2517_s15 + $0xd8] sm:$0xff] %v1862_v6  ;;  %1552 = vst [vmem:[%s2517_s15 + $0x1d8] sm:$0xff] %v1894_v7 }
 0x1d9   : > { %v930_v8 = vpop.f32.mrb[56].mxu0  ;;  %v1090_v9 = vpop.f32.mrb[56].mxu1 }
 0x1da   : > { %v932_v10 = vpop.f32.mrb[57].mxu0  ;;  %v1092_v11 = vpop.f32.mrb[57].mxu1 }
 0x1db   : > { %v1863_v12 = vpack.c.bf16 %v932_v10, %v930_v8  ;;  %v1895_v13 = vpack.c.bf16 %v1092_v11, %v1090_v9  ;;  %v934_v14 = vpop.f32.mrb[58].mxu0  ;;  %v1094_v15 = vpop.f32.mrb[58].mxu1 }
 0x1dc   : > { %v936_v16 = vpop.f32.mrb[59].mxu0  ;;  %v1096_v17 = vpop.f32.mrb[59].mxu1 }
 0x1dd   : > { %1521 = vst [vmem:[%s2517_s15 + $0xe0] sm:$0xff] %v1863_v12  ;;  %1553 = vst [vmem:[%s2517_s15 + $0x1e0] sm:$0xff] %v1895_v13  ;;  %v1864_v18 = vpack.c.bf16 %v936_v16, %v934_v14  ;;  %v1896_v19 = vpack.c.bf16 %v1096_v17, %v1094_v15 }
 0x1df   : > { %1522 = vst [vmem:[%s2517_s15 + $0xe8] sm:$0xff] %v1864_v18  ;;  %1554 = vst [vmem:[%s2517_s15 + $0x1e8] sm:$0xff] %v1896_v19 }
 0x1e1   : > { %v940_v20 = vpop.f32.mrb[60].mxu0  ;;  %v1100_v21 = vpop.f32.mrb[60].mxu1 }
 0x1e2   : > { %v942_v22 = vpop.f32.mrb[61].mxu0  ;;  %v1102_v23 = vpop.f32.mrb[61].mxu1 }
 0x1e3   : > { %v1865_v24 = vpack.c.bf16 %v942_v22, %v940_v20  ;;  %v1897_v25 = vpack.c.bf16 %v1102_v23, %v1100_v21  ;;  %v944_v26 = vpop.f32.mrb[62].mxu0  ;;  %v1104_v27 = vpop.f32.mrb[62].mxu1 }
 0x1e4   : > { %v946_v28 = vpop.f32.mrb[63].mxu0  ;;  %v1106_v29 = vpop.f32.mrb[63].mxu1 }
 0x1e5   : > { %1523 = vst [vmem:[%s2517_s15 + $0xf0] sm:$0xff] %v1865_v24  ;;  %1555 = vst [vmem:[%s2517_s15 + $0x1f0] sm:$0xff] %v1897_v25  ;;  %v1866_v30 = vpack.c.bf16 %v946_v28, %v944_v26  ;;  %v1898_v31 = vpack.c.bf16 %v1106_v29, %v1104_v27 }
 0x1e7   : > { %1524 = vst [vmem:[%s2517_s15 + $0xf8] sm:$0xff] %v1866_v30  ;;  %1556 = vst [vmem:[%s2517_s15 + $0x1f8] sm:$0xff] %v1898_v31 }
 0x1e8   : > { %2209 = shalt.err (!%p2206_p7)
}
 0x1e9   : > { %s2210_s20 = scalar_lea.hbm %s2584_s22, 8192  ;;  %s2214_s25 = scalar_lea.hbm %s2636_s2, 16384 }
 0x1ea   : > { %p2211_p9 = scmp.ne.s32.totalorder %s2584_s22, %s2210_s20  ;;  %p2215_p5 = scmp.lt.u32.totalorder %s2584_s22, %s2636_s2 }
 0x1eb   : > { %p2216_p11 = scmp.lt.u32.totalorder %s2214_s25, %s2210_s20  ;;  %p2218_p4 = scmp.lt.u32.totalorder %s2210_s20, %s2584_s22 }
 0x1ec   : > { %p2212_p1 = pnand %p2211_p9, %p2384_p12 }
 0x1ed   : > { %p2217_p2 = por %p2216_p11, %p2215_p5 }
 0x1ee   : > { %p2213_p0 = pneg %p2212_p1 }
 0x1ef   : > { %p2219_p6 = por %p2218_p4, %p2217_p2 }
 0x1f1   : > { %p2220_p8 = pnand %p2219_p6, %p2213_p0 }
 0x1f3   : > { %2223 = shalt.err (!%p2220_p8)
}
 0x1f4   : > { %s2273_s30 = smov 128   ;;  %s2274_s23 = smov 8  }
 0x1f5   : > { %1939 = dma.vmem_to_hbm [thread:$0]  (%p2384_p12), %s2586_s4, 8192, %s2584_s22, %s1558_s13, %s2273_s30, %s2273_s30, %s2274_s23  }
 0x1f6 PF: > { %s1587_s15 = sand.u32 1, %s2254_s9   ;;  %p2651_p10 = scmp.ne.s32.totalorder %s2641_s16, 0 }
 0x1f7   : > { %p2652_p13 = scmp.ge.s32.totalorder %s2266_s12, 2  ;;  %s1588_s17 = scalar_lea.sflag [#allocation4], %s1587_s15 }
 0x1f9   : > { %p1950_p3 = pnand %p2652_p13, %p2651_p10 }
 0x1fb   : > { %2249 = dma.done.wait (!%p1950_p3), %s1588_s17, 8192  }
 0x1fc   : > { %2251 = vsyncadd (!%p1950_p3), %s1588_s17, 4294959104  ;;  %p16_p7 = scmp.ge.s32.totalorder %s2346_s21, 4   ;;  %s2653_s9 = smov %s2258_s10 }
 0x1fd   : > { %s2654_s10 = smov %s2262_s11  ;;  %s2655_s11 = smov %s2380_s8 }
 0x1fe   : > { %s2656_s12 = smov %s2346_s21  ;;  %18 = sbr.rel (!%p16_p7) target bundleno = 6 (0x6), region = 77 }
 0x205   :  { %1593 = vsyncpa [#allocation3], 1 }
 0x206   :  { %1595 = vsyncpa [#allocation3 + $0x1], 1 }
 0x207   :  { %1596 = vsyncpa [#allocation6], 1 }
 0x208   :  { %1597 = vsyncpa [#allocation4], 1 }
 0x209   :  { %1599 = vsyncpa [#allocation4 + $0x1], 1 }

</bundles_post_ra>
